<compile_context>
chip_gen: v5e
topology: v5e:2x2
jax: 0.10.0
libtpu: 0.0.40
codegen_flags: <defaults>
</compile_context>

<pallas_src>
import numpy as np
import jax
import jax.numpy as jnp
from jax import lax
from jax.experimental import pallas as pl
from jax.experimental.pallas import tpu as pltpu


def _roi_align_kernel(gb_ref, ty_ref, tx_ref, feat_ref, out_ref):
    """One (channel-chunk, ROI-group) grid step.

    ty_ref:   (1, P*R, H)      group Y tent weights, rows ph-major (row = ph*R + r),
                               exact 1/count normalizer already folded in.
    tx_ref:   (1, R, P, W)     per-ROI X tent weights.
    feat_ref: (1, 1, H, W*CT)  channels-last-fused feature chunk of one image.
    out_ref:  (1, R, P, P, CT) pooled block [r, ph, pw, c] — lane-dense in channels.
    """
    del gb_ref                                     # consumed only by the feature index_map
    pr = ty_ref.shape[1]                           # P*R
    _, r_blk, p, w = tx_ref.shape
    ct = out_ref.shape[4]

    ty = ty_ref[0]                                 # (P*R, H)
    f = feat_ref[0, 0]                             # (H, W*CT)
    # Stage 1: single big un-batched MXU matmul (M=P*R, K=H, N=W*CT).
    a = jnp.dot(ty, f, preferred_element_type=jnp.float32)        # (P*R, W*CT)
    # Un-fuse the (W, CT) lane for the X contraction (one small relayout of A).
    a = a.reshape(pr, w, ct)                                       # (P*R, W, CT)

    tx = tx_ref[0]                                 # (R, P, W)
    for ph in range(p):                            # static unroll over the few output rows
        a_ph = a[ph * r_blk:(ph + 1) * r_blk]      # (R, W, CT) contiguous row slice
        # Stage 2: batched-over-ROI matmul contracting W; channels stay on the lane.
        o_ph = lax.dot_general(
            tx, a_ph,
            dimension_numbers=(((2,), (1,)), ((0,), (0,))),
            preferred_element_type=jnp.float32)                    # (R, P, CT)
        out_ref[0, :, ph] = o_ph.astype(out_ref.dtype)


def _tent_weights_np(start, bin_sz, grid_n, P, L):
    """Sample-summed 1-D bilinear ("tent") weights, torchvision roi_align rules.

    Returns (K, P, L).  Accumulates over the adaptive sample axis instead of
    materializing a (K, P, MS, L) temporary.
    """
    K = int(start.shape[0])
    MS = int(max(1.0, float(np.max(grid_n)))) if K > 0 else 1
    p = np.arange(P, dtype=np.float32).reshape(1, P, 1)
    grid = np.arange(L, dtype=np.float32).reshape(1, 1, L)
    st = start.reshape(K, 1, 1).astype(np.float32)
    bs = bin_sz.reshape(K, 1, 1).astype(np.float32)
    gn_raw = grid_n.reshape(K, 1, 1).astype(np.float32)
    gn = np.maximum(gn_raw, 1.0)                   # NaN guard for degenerate boxes
    out = np.zeros((K, P, L), dtype=np.float32)
    for s in range(MS):
        coord = st + p * bs + (np.float32(s) + 0.5) * bs / gn              # (K, P, 1)
        valid = (np.float32(s) < gn_raw) & (coord >= -1.0) & (coord <= float(L))
        cc = np.clip(coord, 0.0, float(L - 1))
        w = np.maximum(0.0, 1.0 - np.abs(cc - grid))                       # (K, P, L)
        out += w * valid.astype(np.float32)
    return out


def _round_up(x, m):
    return ((x + m - 1) // m) * m


def _vmem_capacity_bytes():
    try:
        cap = int(getattr(pltpu.get_tpu_info(), "vmem_capacity_bytes"))
        if cap > 0:
            return cap
    except Exception:
        pass
    return 64 << 20                                 # conservative (v7x-sized) fallback


def _plan_tiles(C, H, W, P, r_target, cap):
    """Choose (c_tile, R, vmem_limit).  Accounts for lane(128)/sublane(8) padding,
    double-buffered pipeline blocks and the stage-1 intermediate (plus its relayout)."""
    budget = int(cap * 0.75)
    cands = {C}
    m = 128
    while m < C:                                    # chunks must keep the out lane dense
        if C % m == 0:
            cands.add(m)
        m += 128
    best = None
    for ct in sorted(cands, reverse=True):
        wc_pad = _round_up(W * ct, 128)
        h_pad = _round_up(H, 8)
        feat = 2 * 4 * h_pad * wc_pad               # double-buffered feature chunk
        r = r_target
        while r >= 1:
            pr = _round_up(P * r, 8)
            a_b = 2 * 4 * pr * wc_pad               # stage-1 result + relayout copy
            ty_b = 2 * 4 * pr * _round_up(H, 128)
            tx_b = 2 * 4 * r * _round_up(P, 8) * _round_up(W, 128)
            out_b = 2 * 4 * r * P * _round_up(P, 8) * _round_up(ct, 128)
            total = feat + a_b + ty_b + tx_b + out_b + (2 << 20)
            if total <= budget:
                break
            r = r // 2
        if r >= 1:
            score = ct * r
            if best is None or score > best[0]:
                best = (score, ct, r, total)
    if best is None:                                # degenerate fallback: smallest tiles
        return min(cands), 1, int(cap * 0.9)
    _, ct, r, total = best
    vmem_limit = int(min(cap * 0.9, max(total + (16 << 20), 32 << 20)))
    return ct, r, vmem_limit


def roi_align_pallas(features, boxes, output_size, spatial_scale=1.0, aligned=False):
    """ROI Align forward (sampling_ratio=-1) with a Pallas TPU kernel.

    features: (N, C, H, W) float; boxes: (K, 5) rows (batch_index, x1, y1, x2, y2)
    in un-scaled image coordinates.  Returns (K, C, P, P) float32.
    """
    features = jnp.asarray(features)
    if features.dtype != jnp.float32:
        features = features.astype(jnp.float32)
    N, C, H, W = (int(d) for d in features.shape)
    P = int(output_size)

    # TODO(synk): the box -> tent-weight precompute and per-image ROI grouping stay on
    # the host (data-dependent sample counts / group sizes have no static-shape Pallas
    # equivalent without capping the adaptive sampling grid).
    b = np.asarray(jax.device_get(boxes), dtype=np.float32)
    K = int(b.shape[0])
    if K == 0:
        return jnp.zeros((0, C, P, P), jnp.float32)

    scale = np.float32(spatial_scale)
    off = np.float32(0.5) if aligned else np.float32(0.0)
    batch_idx = b[:, 0].astype(np.int32)
    x1 = b[:, 1] * scale - off
    y1 = b[:, 2] * scale - off
    x2 = b[:, 3] * scale - off
    y2 = b[:, 4] * scale - off
    roi_w = x2 - x1
    roi_h = y2 - y1
    if not aligned:
        roi_w = np.maximum(roi_w, np.float32(1.0))
        roi_h = np.maximum(roi_h, np.float32(1.0))
    bin_w = roi_w / np.float32(P)
    bin_h = roi_h / np.float32(P)
    grid_h = np.ceil(roi_h / np.float32(P)).astype(np.float32)    # sampling_ratio = -1
    grid_w = np.ceil(roi_w / np.float32(P)).astype(np.float32)
    count = np.maximum(grid_h * grid_w, np.float32(1.0))

    # Per-ROI tent weights; fold the exact 1/count normalizer into TY once per ROI.
    ty = _tent_weights_np(y1, bin_h, grid_h, P, H) / count[:, None, None]   # (K, P, H)
    tx = _tent_weights_np(x1, bin_w, grid_w, P, W)                          # (K, P, W)

    # ---- group ROIs by image, pad each image's run to a multiple of R ---------------
    order = np.argsort(batch_idx, kind="stable")
    counts = np.bincount(batch_idx, minlength=N).astype(np.int64)
    r_data = int(counts.max())
    r_target = max(1, min(128 // max(P, 1), r_data))
    if r_target >= 8:
        r_target = (r_target // 8) * 8             # keep per-ph row slices tile-aligned

    cap = _vmem_capacity_bytes()
    c_tile, R, vmem_limit = _plan_tiles(C, H, W, P, r_target, cap)
    nc = C // c_tile

    pad_counts = ((counts + R - 1) // R) * R
    K_pad = int(pad_counts.sum())
    G = K_pad // R
    groups_per_image = (pad_counts // R).astype(np.int64)

    slot_start = np.zeros((N,), np.int64)
    slot_start[1:] = np.cumsum(pad_counts)[:-1]
    k_start = np.zeros((N,), np.int64)
    k_start[1:] = np.cumsum(counts)[:-1]
    g_start = np.zeros((N,), np.int64)
    g_start[1:] = np.cumsum(groups_per_image)[:-1]

    ty_pad = np.zeros((K_pad, P, H), np.float32)
    tx_pad = np.zeros((K_pad, P, W), np.float32)
    slot_of = np.zeros((K,), np.int64)
    gb = np.zeros((max(G, 1),), np.int32)
    for n in range(N):
        cnt = int(counts[n])
        gpi = int(groups_per_image[n])
        gb[int(g_start[n]):int(g_start[n]) + gpi] = n
        if cnt == 0:
            continue
        ks = order[int(k_start[n]):int(k_start[n]) + cnt]
        sl = int(slot_start[n])
        ty_pad[sl:sl + cnt] = ty[ks]
        tx_pad[sl:sl + cnt] = tx[ks]
        slot_of[ks] = np.arange(sl, sl + cnt)

    # ph-major row order within each group so the kernel's per-ph slices are contiguous.
    ty_g = ty_pad.reshape(G, R, P, H).transpose(0, 2, 1, 3).reshape(G, P * R, H)
    tx_g = tx_pad.reshape(G, R, P, W)

    # Channels-last fused feature layout (one device-side transpose): (N, nc, H, W*c_tile).
    f_r = features.reshape(N, nc, c_tile, H, W)
    f_r = jnp.transpose(f_r, (0, 1, 3, 4, 2)).reshape(N, nc, H, W * c_tile)

    out_pad = pl.pallas_call(
        _roi_align_kernel,
        out_shape=jax.ShapeDtypeStruct((G, R, P, P, C), jnp.float32),
        grid_spec=pltpu.PrefetchScalarGridSpec(
            num_scalar_prefetch=1,
            grid=(nc, G),                                   # ROI-group axis innermost
            in_specs=[
                pl.BlockSpec((1, P * R, H), lambda c, g, bi: (g, 0, 0)),           # TY
                pl.BlockSpec((1, R, P, W), lambda c, g, bi: (g, 0, 0, 0)),         # TX
                pl.BlockSpec((1, 1, H, W * c_tile),
                             lambda c, g, bi: (bi[g], c, 0, 0)),                   # features
            ],
            out_specs=pl.BlockSpec((1, R, P, P, c_tile),
                                   lambda c, g, bi: (g, 0, 0, 0, c)),
        ),
        compiler_params=pltpu.CompilerParams(
            dimension_semantics=("parallel", "parallel"),
            vmem_limit_bytes=vmem_limit,
        ),
    )(jnp.asarray(gb), jnp.asarray(ty_g), jnp.asarray(tx_g), f_r)

    out = out_pad.reshape(K_pad, P, P, C)
    out = jnp.take(out, jnp.asarray(slot_of, dtype=jnp.int32), axis=0)   # (K, P, P, C)
    return jnp.transpose(out, (0, 3, 1, 2))                              # (K, C, P, P)


def _roi_align_ref(features, boxes, P, scale, aligned=False):
    """Pure NumPy reference with torchvision roi_align semantics (sampling_ratio=-1)."""
    feats = np.asarray(features, dtype=np.float64)
    bxs = np.asarray(boxes, dtype=np.float64)
    _, C, H, W = feats.shape
    K = bxs.shape[0]
    out = np.zeros((K, C, P, P), dtype=np.float64)
    off = 0.5 if aligned else 0.0
    for k in range(K):
        b = int(bxs[k, 0])
        x1 = bxs[k, 1] * scale - off
        y1 = bxs[k, 2] * scale - off
        x2 = bxs[k, 3] * scale - off
        y2 = bxs[k, 4] * scale - off
        rw, rh = x2 - x1, y2 - y1
        if not aligned:
            rw, rh = max(rw, 1.0), max(rh, 1.0)
        bw, bh = rw / P, rh / P
        gw, gh = int(np.ceil(rw / P)), int(np.ceil(rh / P))
        cnt = max(gh * gw, 1)
        for ph in range(P):
            for pw in range(P):
                acc = np.zeros((C,), dtype=np.float64)
                for iy in range(gh):
                    y = y1 + ph * bh + (iy + 0.5) * bh / gh
                    for ix in range(gw):
                        x = x1 + pw * bw + (ix + 0.5) * bw / gw
                        if y < -1.0 or y > H or x < -1.0 or x > W:
                            continue
                        yy = min(max(y, 0.0), H - 1)
                        xx = min(max(x, 0.0), W - 1)
                        yl, xl = int(np.floor(yy)), int(np.floor(xx))
                        yh, xh = min(yl + 1, H - 1), min(xl + 1, W - 1)
                        ly, lx = yy - yl, xx - xl
                        acc += (feats[b, :, yl, xl] * (1 - ly) * (1 - lx)
                                + feats[b, :, yl, xh] * (1 - ly) * lx
                                + feats[b, :, yh, xl] * ly * (1 - lx)
                                + feats[b, :, yh, xh] * ly * lx)
                out[k, :, ph, pw] = acc / cnt
    return out


if __name__ == "__main__":
    # ROI_ALIGN module config: kernel_size=4, scale=0.5 (no trainable parameters).
    N, C, H, W = 2, 4, 16, 16
    K, P, scale = 3, 4, 0.5

    key = jax.random.PRNGKey(0)
    kf, kb1, kb2 = jax.random.split(key, 3)
    features = jax.random.normal(kf, (N, C, H, W), dtype=jnp.float32)
    # Boxes in original-image coordinates (image is 32x32 since scale=0.5).
    xy1 = jax.random.uniform(kb1, (K, 2), minval=0.0, maxval=20.0, dtype=jnp.float32)
    wh = jax.random.uniform(kb2, (K, 2), minval=2.0, maxval=12.0, dtype=jnp.float32)
    xy2 = xy1 + wh
    bidx = jnp.array([[0.0], [1.0], [0.0]], dtype=jnp.float32)
    boxes = jnp.concatenate([bidx, xy1, xy2], axis=1)   # (K, 5): (b, x1, y1, x2, y2)

    out = roi_align_pallas(features, boxes, P, spatial_scale=scale, aligned=False)
    out = jax.block_until_ready(out)

    ref = _roi_align_ref(np.asarray(features), np.asarray(boxes), P, scale, aligned=False)
    assert out.shape == (K, C, P, P), out.shape
    err = np.max(np.abs(np.asarray(out, np.float64) - ref))
    assert np.allclose(np.asarray(out), ref, rtol=1e-4, atol=1e-4), f"max abs err {err}"
    print("KERNEL_OK")
</pallas_src>

<mosaic_0001>
module attributes {stable_mosaic.version = 11 : i64} {
  func.func @_roi_align_kernel(%arg0: i32, %arg1: i32, %arg2: memref<2xi32, #tpu.memory_space<smem>>, %arg3: memref<1x8x16xf32, #tpu.memory_space<vmem>>, %arg4: memref<1x2x4x16xf32, #tpu.memory_space<vmem>>, %arg5: memref<1x1x16x64xf32, #tpu.memory_space<vmem>>, %arg6: memref<1x2x4x4x4xf32, #tpu.memory_space<vmem>>) attributes {dimension_semantics = [#tpu.dimension_semantics<parallel>, #tpu.dimension_semantics<parallel>], iteration_bounds = array<i64: 1, 2>, scalar_prefetch = 1 : i64, scratch_operands = 0 : i64, tpu.core_type = #tpu.core_type<tc>, window_params = [{transform_indices = @transform_0, window_bounds = array<i64: 1, 8, 16>}, {transform_indices = @transform_1, window_bounds = array<i64: 1, 2, 4, 16>}, {transform_indices = @transform_2, window_bounds = array<i64: 1, 1, 16, 64>}, {transform_indices = @transform_3, window_bounds = array<i64: 1, 2, 4, 4, 4>}]} {
    %c0 = arith.constant 0 : index
    %c0_0 = arith.constant 0 : index
    %c0_1 = arith.constant 0 : index
    %0 = vector.load %arg3[%c0, %c0_0, %c0_1] : memref<1x8x16xf32, #tpu.memory_space<vmem>>, vector<1x8x16xf32>
    %1 = vector.shape_cast %0 : vector<1x8x16xf32> to vector<8x16xf32>
    %c0_2 = arith.constant 0 : index
    %c0_3 = arith.constant 0 : index
    %c0_4 = arith.constant 0 : index
    %c0_5 = arith.constant 0 : index
    %2 = vector.load %arg5[%c0_2, %c0_3, %c0_4, %c0_5] : memref<1x1x16x64xf32, #tpu.memory_space<vmem>>, vector<1x1x16x64xf32>
    %3 = vector.shape_cast %2 : vector<1x1x16x64xf32> to vector<16x64xf32>
    %cst = arith.constant dense<0.000000e+00> : vector<8x64xf32>
    %4 = tpu.matmul %1, %3, %cst {dimension_numbers = #tpu.dot_dimension_numbers<[1], [0], [0], [1], [0, 0, 1, 1], [], []>} : vector<8x16xf32>, vector<16x64xf32>, vector<8x64xf32> -> vector<8x64xf32>
    %5 = vector.shape_cast %4 : vector<8x64xf32> to vector<8x16x4xf32>
    %c0_6 = arith.constant 0 : index
    %c0_7 = arith.constant 0 : index
    %c0_8 = arith.constant 0 : index
    %c0_9 = arith.constant 0 : index
    %6 = vector.load %arg4[%c0_6, %c0_7, %c0_8, %c0_9] : memref<1x2x4x16xf32, #tpu.memory_space<vmem>>, vector<1x2x4x16xf32>
    %7 = vector.shape_cast %6 : vector<1x2x4x16xf32> to vector<2x4x16xf32>
    %8 = vector.extract_strided_slice %5 {offsets = [0, 0, 0], sizes = [2, 16, 4], strides = [1, 1, 1]} : vector<8x16x4xf32> to vector<2x16x4xf32>
    %cst_10 = arith.constant dense<0.000000e+00> : vector<2x4x4xf32>
    %9 = tpu.matmul %7, %8, %cst_10 {dimension_numbers = #tpu.dot_dimension_numbers<[2], [1], [1], [2], [0, 0, 0, 1, 1, 2], [0], [0]>} : vector<2x4x16xf32>, vector<2x16x4xf32>, vector<2x4x4xf32> -> vector<2x4x4xf32>
    %c0_11 = arith.constant 0 : index
    %c0_12 = arith.constant 0 : index
    %c0_13 = arith.constant 0 : index
    %c0_14 = arith.constant 0 : index
    %c0_15 = arith.constant 0 : index
    %10 = vector.load %arg6[%c0_11, %c0_12, %c0_13, %c0_14, %c0_15] : memref<1x2x4x4x4xf32, #tpu.memory_space<vmem>>, vector<1x2x1x4x4xf32>
    %11 = vector.shape_cast %10 : vector<1x2x1x4x4xf32> to vector<2x4x4xf32>
    %12 = vector.shape_cast %9 : vector<2x4x4xf32> to vector<1x2x1x4x4xf32>
    tpu.vector_store %arg6[%c0_11, %c0_12, %c0_13, %c0_14, %c0_15], %12 {strides = array<i32>} : memref<1x2x4x4x4xf32, #tpu.memory_space<vmem>>, vector<1x2x1x4x4xf32>,
    %13 = vector.extract_strided_slice %5 {offsets = [2, 0, 0], sizes = [2, 16, 4], strides = [1, 1, 1]} : vector<8x16x4xf32> to vector<2x16x4xf32>
    %cst_16 = arith.constant dense<0.000000e+00> : vector<2x4x4xf32>
    %14 = tpu.matmul %7, %13, %cst_16 {dimension_numbers = #tpu.dot_dimension_numbers<[2], [1], [1], [2], [0, 0, 0, 1, 1, 2], [0], [0]>} : vector<2x4x16xf32>, vector<2x16x4xf32>, vector<2x4x4xf32> -> vector<2x4x4xf32>
    %c0_17 = arith.constant 0 : index
    %c0_18 = arith.constant 0 : index
    %c1 = arith.constant 1 : index
    %c0_19 = arith.constant 0 : index
    %c0_20 = arith.constant 0 : index
    %15 = vector.load %arg6[%c0_17, %c0_18, %c1, %c0_19, %c0_20] : memref<1x2x4x4x4xf32, #tpu.memory_space<vmem>>, vector<1x2x1x4x4xf32>
    %16 = vector.shape_cast %15 : vector<1x2x1x4x4xf32> to vector<2x4x4xf32>
    %17 = vector.shape_cast %14 : vector<2x4x4xf32> to vector<1x2x1x4x4xf32>
    tpu.vector_store %arg6[%c0_17, %c0_18, %c1, %c0_19, %c0_20], %17 {strides = array<i32>} : memref<1x2x4x4x4xf32, #tpu.memory_space<vmem>>, vector<1x2x1x4x4xf32>,
    %18 = vector.extract_strided_slice %5 {offsets = [4, 0, 0], sizes = [2, 16, 4], strides = [1, 1, 1]} : vector<8x16x4xf32> to vector<2x16x4xf32>
    %cst_21 = arith.constant dense<0.000000e+00> : vector<2x4x4xf32>
    %19 = tpu.matmul %7, %18, %cst_21 {dimension_numbers = #tpu.dot_dimension_numbers<[2], [1], [1], [2], [0, 0, 0, 1, 1, 2], [0], [0]>} : vector<2x4x16xf32>, vector<2x16x4xf32>, vector<2x4x4xf32> -> vector<2x4x4xf32>
    %c0_22 = arith.constant 0 : index
    %c0_23 = arith.constant 0 : index
    %c2 = arith.constant 2 : index
    %c0_24 = arith.constant 0 : index
    %c0_25 = arith.constant 0 : index
    %20 = vector.load %arg6[%c0_22, %c0_23, %c2, %c0_24, %c0_25] : memref<1x2x4x4x4xf32, #tpu.memory_space<vmem>>, vector<1x2x1x4x4xf32>
    %21 = vector.shape_cast %20 : vector<1x2x1x4x4xf32> to vector<2x4x4xf32>
    %22 = vector.shape_cast %19 : vector<2x4x4xf32> to vector<1x2x1x4x4xf32>
    tpu.vector_store %arg6[%c0_22, %c0_23, %c2, %c0_24, %c0_25], %22 {strides = array<i32>} : memref<1x2x4x4x4xf32, #tpu.memory_space<vmem>>, vector<1x2x1x4x4xf32>,
    %23 = vector.extract_strided_slice %5 {offsets = [6, 0, 0], sizes = [2, 16, 4], strides = [1, 1, 1]} : vector<8x16x4xf32> to vector<2x16x4xf32>
    %cst_26 = arith.constant dense<0.000000e+00> : vector<2x4x4xf32>
    %24 = tpu.matmul %7, %23, %cst_26 {dimension_numbers = #tpu.dot_dimension_numbers<[2], [1], [1], [2], [0, 0, 0, 1, 1, 2], [0], [0]>} : vector<2x4x16xf32>, vector<2x16x4xf32>, vector<2x4x4xf32> -> vector<2x4x4xf32>
    %c0_27 = arith.constant 0 : index
    %c0_28 = arith.constant 0 : index
    %c3 = arith.constant 3 : index
    %c0_29 = arith.constant 0 : index
    %c0_30 = arith.constant 0 : index
    %25 = vector.load %arg6[%c0_27, %c0_28, %c3, %c0_29, %c0_30] : memref<1x2x4x4x4xf32, #tpu.memory_space<vmem>>, vector<1x2x1x4x4xf32>
    %26 = vector.shape_cast %25 : vector<1x2x1x4x4xf32> to vector<2x4x4xf32>
    %27 = vector.shape_cast %24 : vector<2x4x4xf32> to vector<1x2x1x4x4xf32>
    tpu.vector_store %arg6[%c0_27, %c0_28, %c3, %c0_29, %c0_30], %27 {strides = array<i32>} : memref<1x2x4x4x4xf32, #tpu.memory_space<vmem>>, vector<1x2x1x4x4xf32>,
    return
  }
  func.func @transform_0(%arg0: i32, %arg1: i32, %arg2: memref<2xi32, #tpu.memory_space<smem>>) -> (i32, i32, i32) {
    %c0_i32 = arith.constant 0 : i32
    %c0_i32_0 = arith.constant 0 : i32
    %c0_i32_1 = arith.constant 0 : i32
    return %arg1, %c0_i32, %c0_i32_0 : i32, i32, i32
  }
  func.func @transform_1(%arg0: i32, %arg1: i32, %arg2: memref<2xi32, #tpu.memory_space<smem>>) -> (i32, i32, i32, i32) {
    %c0_i32 = arith.constant 0 : i32
    %c0_i32_0 = arith.constant 0 : i32
    %c0_i32_1 = arith.constant 0 : i32
    %c0_i32_2 = arith.constant 0 : i32
    return %arg1, %c0_i32, %c0_i32_0, %c0_i32_1 : i32, i32, i32, i32
  }
  func.func @transform_2(%arg0: i32, %arg1: i32, %arg2: memref<2xi32, #tpu.memory_space<smem>>) -> (i32, i32, i32, i32) {
    %0 = arith.index_cast %arg1 : i32 to index
    %1 = memref.load %arg2[%0] : memref<2xi32, #tpu.memory_space<smem>>
    %c0_i32 = arith.constant 0 : i32
    %c0_i32_0 = arith.constant 0 : i32
    %c0_i32_1 = arith.constant 0 : i32
    return %1, %arg0, %c0_i32, %c0_i32_0 : i32, i32, i32, i32
  }
  func.func @transform_3(%arg0: i32, %arg1: i32, %arg2: memref<2xi32, #tpu.memory_space<smem>>) -> (i32, i32, i32, i32, i32) {
    %c0_i32 = arith.constant 0 : i32
    %c0_i32_0 = arith.constant 0 : i32
    %c0_i32_1 = arith.constant 0 : i32
    %c0_i32_2 = arith.constant 0 : i32
    return %arg1, %c0_i32, %c0_i32_0, %c0_i32_1, %arg0 : i32, i32, i32, i32, i32
  }
}

</mosaic_0001>

<bundles_post_ra>
// kernel: tpu_custom_call.1
= control target key start
LH: loop header
LB: loop body
LE: loop exit
PB: predicated region body
PF: predicated region fallthrough
CT: control target
= control target key end

     0   :  { %s1308_s18 = smov [#allocation3]   ;;  %s1786_s0 = inlined_call_operand.hbm [shape: s32[2], index: 0, kind: input, shape index: {}]   ;;  %s1787_s1 = inlined_call_operand.hbm [shape: f32[2,8,16], index: 1, kind: input, shape index: {}]   ;;  %s1788_s2 = inlined_call_operand.hbm [shape: f32[2,2,4,16], index: 2, kind: input, shape index: {}]   ;;  %s1789_s3 = inlined_call_operand.hbm [shape: f32[2,1,16,64], index: 3, kind: input, shape index: {}]   ;;  %s1790_s4 = inlined_call_operand.hbm [shape: f32[2,2,4,4,4], index: 4, kind: output, shape index: {}]  }
   0x1   :  { %1794 = sst [smem:[#allocation22_spill]] %s1787_s1  ;;  %s10_s17 = sshll.u32 %s1786_s0, 4  ;;  %s11_s17 = int_to_ptr.hbm [resolvable:$true] %s10_s17 }
   0x2   :  { %1795 = sst [smem:[#allocation23_spill]] %s1788_s2 }
   0x3   :  { %13 = dma.hbm_to_smem %s11_s17, 16, %s1308_s18, [#allocation2] }
   0x4   :  { %1254 = dma.done.wait [#allocation2], 16 }
   0x5   :  { %1255 = vsyncadd [#allocation2], 4294967280 }
   0x6   :  { %16 = sfence }
   0x7   :  { %17 = vsyncpa [#allocation5], 0 }
   0x8   :  { %19 = vsyncpa [#allocation5 + $0x1], 0 }
   0x9   :  { %20 = vsyncpa [#allocation8], 0 }
   0xa   :  { %22 = vsyncpa [#allocation8 + $0x1], 0 }
   0xb   :  { %23 = vsyncpa [#allocation6], 0 }
   0xc   :  { %25 = vsyncpa [#allocation6 + $0x1], 0  ;;  %s1360_s19 = smov 0   ;;  %s1362_s20 = smov 0  }
   0xd   :  { %s1364_s21 = smov 0   ;;  %s1366_s22 = smov 0  }
   0xe   :  { %s1368_s0 = smov 0   ;;  %s1370_s23 = smov 0  }
   0xf   :  { %s1372_s24 = smov 0   ;;  %s1374_s25 = smov 0  }
  0x10   :  { %s1376_s26 = smov 0  }
  0x11 LB: > { %1796 = sst [smem:[#allocation18_spill]] %s1294_s23  ;;  %s1406_s27 = sadd.s32 4294967295, %s1306_s26   ;;  %s1306_s26 = sphi %s1376_s26, %s31_s26   ;;  %s1302_s25 = sphi %s1374_s25, %s1821_s25   ;;  %s1298_s24 = sphi %s1372_s24, %s1820_s24   ;;  %s1294_s23 = sphi %s1370_s23, %s1813_s23   ;;  %s1290_s0 = sphi %s1368_s0, %s1819_s0   ;;  %s1286_s22 = sphi %s1366_s22, %s1818_s22   ;;  %s1282_s21 = sphi %s1364_s21, %s1817_s21   ;;  %s1278_s20 = sphi %s1362_s20, %s1816_s20   ;;  %s1274_s19 = sphi %s1360_s19, %s1815_s19  }
  0x12   : > { %s925_s28 = sadd.s32 4294967294, %s1306_s26   ;;  %s40_s29 = sadd.s32 1, %s1302_s25 }
  0x13   : > { %s50_s30 = sadd.s32 1, %s1294_s23  ;;  %p41_p0 = scmp.ge.s32.totalorder %s40_s29, 2 }
  0x14   : > { %p57_p1 = scmp.ne.s32.totalorder %s1294_s23, %s1290_s0  ;;  %p58_p2 = scmp.eq.s32.totalorder %s1306_s26, 0 }
  0x15   : > { %p63_p3 = scmp.ne.s32.totalorder %s1290_s0, %s1286_s22  ;;  %s1823_s29 = smov (%p41_p0, %s40_s29), 0 }
  0x16   : > { %1797 = sst [smem:[#allocation19_spill]] %s1823_s29  ;;  %p1423_p4 = por %p58_p2, %p57_p1 }
  0x17   : > { %p64_p5 = scmp.eq.s32.totalorder %s1406_s27, 0  ;;  %s47_s6 = ssub.s32 %s1302_s25, %s1823_s29 }
  0x18   : > { %s1431_s7 = sld [smem:[#allocation3 + %s1302_s25]]  ;;  %p48_p6 = scmp.eq.s32.totalorder %s47_s6, 0 }
  0x19   : > { %p1438_p7 = por %p64_p5, %p63_p3  ;;  %s1443_s9 = sld [smem:[#allocation3 + %s1823_s29]] }
  0x1a   : > { %p145_p8 = scmp.eq.s32.totalorder %s1406_s27, 1  ;;  %p151_p10 = scmp.eq.s32.totalorder %s925_s28, 1 }
  0x1b   : > { %s1447_s10 = scalar_select %p48_p6, %s1294_s23, %s50_s30  }
  0x1c   : > { %p1452_p9 = por %p145_p8, %p57_p1  ;;  %p990_p12 = scmp.lt.s32.totalorder %s1306_s26, 2 }
  0x1d   : > { %1800 = sst [smem:[#allocation20_spill]] %s1447_s10  ;;  %p1461_p13 = por %p151_p10, %p63_p3 }
  0x1e   : > { %s171_s13 = sand.u32 1, %s1294_s23   ;;  %s929_s15 = sshll.u32 %s1302_s25, 3 }
  0x1f   : > { %s1802_s12 = scalar_select %p1461_p13, 1, 0 }
  0x20   : > { %s928_s14 = sshll.u32 %s171_s13, 3  ;;  %p1471_p0 = pnand %p990_p12, %p1423_p4 }
  0x21   : > { %1803 = sst [smem:[#allocation21_spill]] %s1802_s12  ;;  %s190_s17 = sand.u32 1, %s1306_s26  }
  0x22   : > { %s1805_s2 = sld [smem:[#allocation23_spill]]  ;;  %s194_s29 = scalar_lea.vmem [#allocation7], %s928_s14 }
  0x23   : > { %s202_s10 = sshll.u32 %s194_s29, 4  ;;  %s1479_s5 = scalar_lea.sflag [#allocation8], %s190_s17  ;;  %s203_s10 = int_to_ptr.vmem [resolvable:$true] %s202_s10 }
  0x24   : > { %s1309_s23 = smov 64   ;;  %s1310_s12 = smov 4  }
  0x25   : > { %p936_p1 = scmp.ge.s32.totalorder %s1306_s26, 1  ;;  %p235_p3 = scmp.lt.s32.totalorder %s1306_s26, 3 }
  0x26   : > { %s1807_s1 = sld [smem:[#allocation22_spill]]  ;;  %p113_p8 = scmp.ne.s32.totalorder %s1282_s21, %s1278_s20 }
  0x27   : > { %p1486_p4 = pnand %p936_p1, %p235_p3  ;;  %p119_p10 = scmp.ne.s32.totalorder %s1278_s20, %s1274_s19 }
  0x28   : > { %s199_s30 = scalar_lea.hbm %s1805_s2, %s929_s15  ;;  %s175_s2 = scalar_lea.vmem [#allocation4], %s928_s14 }
  0x29   : > { %s200_s6 = sshll.u32 %s199_s30, 4  ;;  %s214_s17 = sand.u32 1, %s1282_s21   ;;  %s201_s6 = int_to_ptr.hbm [resolvable:$true] %s200_s6 }
  0x2a   : > { %980 = dma.hbm_to_vmem [thread:$0]  (!%p1471_p0), %s201_s6, 128, %s203_s10, %s1479_s5, %s1309_s23, %s1309_s23, %s1310_s12  }
  0x2b   : > { %s183_s23 = sshll.u32 %s175_s2, 4  ;;  %s172_s10 = scalar_lea.sflag [#allocation5], %s171_s13  ;;  %s184_s23 = int_to_ptr.vmem [resolvable:$true] %s183_s23 }
  0x2c   : > { %s179_s28 = scalar_lea.hbm %s1807_s1, %s929_s15  ;;  %s101_s12 = ssub.s32 %s1431_s7, %s1443_s9 }
  0x2d   : > { %s181_s30 = sshll.u32 %s179_s28, 4  ;;  %s106_s6 = sadd.s32 1, %s1282_s21  ;;  %s182_s30 = int_to_ptr.hbm [resolvable:$true] %s181_s30 }
  0x2e   : > { %977 = dma.hbm_to_vmem [thread:$0]  (!%p1471_p0), %s182_s30, 128, %s184_s23, %s172_s10  }
  0x2f   : > { %p104_p6 = scmp.eq.s32.totalorder %s101_s12, 0  ;;  %p115_p1 = por %p113_p8, %p58_p2 }
  0x30   : > { %p1510_p3 = por %p119_p10, %p64_p5  ;;  %s933_s14 = sshll.u32 %s214_s17, 4 }
  0x31   : > { %s1504_s15 = scalar_select %p104_p6, %s1282_s21, %s106_s6  }
  0x32   : > { %p1516_p11 = pnand %p990_p12, %p115_p1  ;;  %s216_s16 = scalar_lea.vmem [#allocation9], %s933_s14 }
  0x33   : > { %s966_s7 = scalar_select %p115_p1, [#allocation3], [#allocation11] }
  0x34   : > { %s967_s9 = scalar_select %p115_p1, %s1302_s25, 0 }
  0x35   : > { %s1825_s7 = smov (!%p990_p12, %s966_s7), [#allocation12]  ;;  %s227_s18 = sshll.u32 %s216_s16, 4  ;;  %s228_s18 = int_to_ptr.vmem [resolvable:$true] %s227_s18 }
  0x36   : > { %s1827_s9 = smov (!%p990_p12, %s967_s9), 0  ;;  %p1164_p5 = pneg %p1516_p11 }
  0x37   : > { %s217_s19 = sld [smem:[%s1825_s7 + %s1827_s9]]  ;;  %s1167_s14 = scalar_lea.hbm %s1789_s3, 32 }
  0x3d   : > { %s962_s28 = sshll.u32 %s217_s19, 4 }
  0x3e   : > { %s224_s10 = scalar_lea.hbm %s1789_s3, %s962_s28 }
  0x3f   : > { %s225_s12 = sshll.u32 %s224_s10, 4  ;;  %s226_s12 = int_to_ptr.hbm [resolvable:$true] %s225_s12 }
  0x40   : > { %s1160_s6 = sshra.s32 %s226_s12, 4  ;;  %s1161_s6 = int_to_ptr.hbm [resolvable:$true] %s1160_s6 }
  0x41   : > { %s1162_s17 = scalar_lea.hbm %s1161_s6, 16  ;;  %p1168_p12 = scmp.lt.s32.totalorder %s1161_s6, %s1789_s3 }
  0x42   : > { %p1163_p2 = scmp.ne.s32.totalorder %s1161_s6, %s1162_s17  ;;  %p1169_p8 = scmp.lt.s32.totalorder %s1167_s14, %s1162_s17 }
  0x44   : > { %p1165_p0 = pnand %p1164_p5, %p1163_p2  ;;  %p1170_p10 = por %p1169_p8, %p1168_p12 }
  0x46   : > { %p1166_p6 = pneg %p1165_p0 }
  0x48   : > { %p1171_p1 = pnand %p1170_p10, %p1166_p6 }
  0x4a   : > { %1174 = shalt.err (!%p1171_p1)
}
  0x4b   : > { %s1311_s16 = smov 128   ;;  %s1312_s28 = smov 8  }
  0x4c   : > { %985 = dma.hbm_to_vmem [thread:$0]  (!%p1516_p11), %s226_s12, 256, %s228_s18, %s1479_s5, %s1311_s16, %s1311_s16, %s1312_s28  }
  0x4d   : > { %239 = sbr.rel (%p1486_p4) target bundleno = 527 (0x20f), region = 32  ;;  %s1542_s1 = sand.u32 (!%p1486_p4), 1, %s1290_s0  }
  0x4e   : > { %s937_s30 = sshll.u32 (!%p1486_p4), %s1542_s1, 3  ;;  %s242_s23 = scalar_lea.sflag (!%p1486_p4), [#allocation5], %s1542_s1 }
  0x4f   : > { %s245_s10 = scalar_lea.vmem (!%p1486_p4), [#allocation4], %s937_s30 }
  0x52   : > { %1257 = dma.done.wait (%p1438_p7), %s242_s23, 128  }
  0x53   : > { %1259 = vsyncadd (%p1438_p7), %s242_s23, 4294967168  ;;  %s251_s5 = sand.u32 1, %s1406_s27   ;;  %s1551_s29 = scalar_lea.vmem [#allocation7], %s937_s30 }
  0x54   : > { %s252_s13 = scalar_lea.sflag [#allocation8], %s251_s5 }
  0x55   : > { %1261 = dma.done.wait (%p1438_p7), %s252_s13, 128  }
  0x56   : > { %1263 = vsyncadd (%p1438_p7), %s252_s13, 4294967168  ;;  %s263_s18 = sand.u32 1, %s1278_s20  }
  0x57   : > { %s939_s12 = sshll.u32 %s263_s18, 4 }
  0x58   : > { %s265_s6 = scalar_lea.vmem [#allocation9], %s939_s12 }
  0x59   : > { %1265 = dma.done.wait (%p1510_p3), %s252_s13, 256  }
  0x5a   : > { %1267 = vsyncadd (%p1510_p3), %s252_s13, 4294967040  ;;  %v302_v0 = vld [vmem:[%s265_s6 + $0x8] sm:$0xff]  ;;  %v301_v1 = vld [vmem:[%s265_s6] sm:$0xff]  ;;  %vm303_vm0 = vcmask 130048   ;;  %s1313_s27 = smov 92   ;;  %s1314_s8 = smov 116  }
  0x5b   : > { %321 = vmatpush.msra.mxu0 %v302_v0  ;;  %v300_v2 = vld [vmem:[%s245_s10] sm:$0xff]  ;;  %s1315_s17 = smov 84   ;;  %s1316_s2 = smov 88   ;;  %v1328_v12 = vmov 1983009808   ;;  %vm374_vm1 = vcmask 1047556  }
  0x5c   : > { %s1317_s7 = smov 104   ;;  %s1318_s14 = smov 72   ;;  %v379_v13 = vunpack.c.l.s4 %v1328_v12  ;;  %v1329_v33 = vmov 1934713408   ;;  %vm646_vm2 = vcmask 27648  }
  0x5d   : > { %322 = vmatpush.msra.mxu0 %v301_v1  ;;  %s1319_s9 = smov 124   ;;  %s1320_s19 = smov 68   ;;  %v427_v34 = vunpack.c.l.s4 %v1329_v33 }
  0x5e   : > { %941 = vmatmul.msk.f32.vlgmr.msra.gmra.mxu0 %vm303_vm0, %v300_v2  ;;  %s1321_s16 = smov 80   ;;  %s1322_s28 = smov 100   ;;  %v1582_v20 = vunpack.c.0.s8 %v379_v13 }
  0x5f   : > { %s1323_s30 = smov 112   ;;  %s1324_s23 = smov 120   ;;  %v1611_v46 = vunpack.c.0.s8 %v427_v34 }
  0x60   : > { %s1325_s10 = smov 108   ;;  %s1326_s5 = smov 76  }
  0x61   : > { %s1327_s13 = smov 96   ;;  %s963_s12 = sshll.u32 %s1298_s24, 5 }
  0x62   : > { %s779_s24 = scalar_lea.sflag [#allocation6], %s1542_s1 }
  0xdb   : > { %v1563_v3 = vpop.f32.mrf.mxu0 }
  0xdc   : > { %352 = vrot.lane.b32.xlu2 %v1563_v3, %s1313_s27  ;;  %334 = vrot.lane.b32.xlu1 %v1563_v3, %s1314_s8  ;;  %v376_v42 = vrot.slane %v1563_v3, 4  ;;  %s791_s8 = scalar_lea.hbm %s1790_s4, %s963_s12 }
  0xdd   : > { %358 = vrot.lane.b32.xlu0 %v1563_v3, %s1315_s17 }
  0xe4   : > { %355 = vrot.lane.b32.xlu2 %v1563_v3, %s1316_s2  ;;  %343 = vrot.lane.b32.xlu1 %v1563_v3, %s1317_s7  ;;  %s794_s2 = sshll.u32 %s791_s8, 4  ;;  %s795_s2 = int_to_ptr.hbm [resolvable:$true] %s794_s2 }
  0xe5   : > { %367 = vrot.lane.b32.xlu0 %v1563_v3, %s1318_s14  ;;  %s1204_s7 = sshra.s32 %s795_s2, 4  ;;  %s1205_s7 = int_to_ptr.hbm [resolvable:$true] %s1204_s7 }
  0xe6   : > { %s1206_s14 = scalar_lea.hbm %s1205_s7, 32  ;;  %p1211_p3 = scmp.lt.s32.totalorder %s1205_s7, %s1790_s4 }
  0xe7   : > { %p1207_p7 = scmp.ne.s32.totalorder %s1205_s7, %s1206_s14 }
  0xe9   : > { %p1208_p11 = pnand %p1207_p7, %p1452_p9 }
  0xeb   : > { %p1209_p4 = pneg %p1208_p11 }
  0xec   : > { %328 = vrot.lane.b32.xlu2 %v1563_v3, %s1319_s9  ;;  %370 = vrot.lane.b32.xlu1 %v1563_v3, %s1320_s19 }
  0xed   : > { %361 = vrot.lane.b32.xlu0 %v1563_v3, %s1321_s16  ;;  %s1210_s16 = scalar_lea.hbm %s1790_s4, 64 }
  0xee   : > { %p1212_p2 = scmp.lt.s32.totalorder %s1210_s16, %s1206_s14 }
  0xf0   : > { %p1213_p5 = por %p1212_p2, %p1211_p3 }
  0xf2   : > { %p1214_p0 = pnand %p1213_p5, %p1209_p4 }
  0xf4   : > { %346 = vrot.lane.b32.xlu2 %v1563_v3, %s1322_s28  ;;  %337 = vrot.lane.b32.xlu1 %v1563_v3, %s1323_s30 }
  0xf5   : > { %331 = vrot.lane.b32.xlu0 %v1563_v3, %s1324_s23 }
  0xfc   : > { %340 = vrot.lane.b32.xlu2 %v1563_v3, %s1325_s10  ;;  %364 = vrot.lane.b32.xlu1 %v1563_v3, %s1326_s5 }
  0xfd   : > { %349 = vrot.lane.b32.xlu0 %v1563_v3, %s1327_s13 }
 0x136   : > { %v353_v4 = vpop.permute.xlu2 %352 }
 0x137   : > { %v500_v19 = vrot.slane %v353_v4, 4 }
 0x13e   : > { %v1580_v5 = vpop.permute.xlu2 %355 }
 0x13f   : > { %v486_v41 = vrot.slane %v1580_v5, 4 }
 0x146   : > { %v329_v6 = vpop.permute.xlu2 %328 }
 0x147   : > { %v388_v17 = vrot.slane %v329_v6, 4 }
 0x14e   : > { %v335_v7 = vpop.permute.xlu1 %334  ;;  %v347_v8 = vpop.permute.xlu2 %346 }
 0x14f   : > { %v359_v9 = vpop.permute.xlu0 %358  ;;  %v386_v15 = vrot.slane %v335_v7, 4  ;;  %v410_v21 = vrot.slane %v347_v8, 4  ;;  %v389_v22 = vsel %vm374_vm1, %v335_v7, %v388_v17 }
 0x150   : > { %v498_v16 = vrot.slane %v359_v9, 4  ;;  %v501_v26 = vsel %vm374_vm1, %v359_v9, %v500_v19  ;;  %v397_v31 = vperm.slane %v389_v22, %v1582_v20 }
 0x151   : > { %v387_v24 = vsel %vm374_vm1, %v386_v15, %v329_v6  ;;  %v1598_v37 = vperm.slane %v501_v26, %v1582_v20 }
 0x152   : > { %v499_v25 = vsel %vm374_vm1, %v498_v16, %v353_v4  ;;  %v393_v35 = vperm.slane %v387_v24, %v1582_v20  ;;  %v434_v48 = vrot.slane %v397_v31, 4 }
 0x153   : > { %v1595_v36 = vperm.slane %v499_v25, %v1582_v20  ;;  %v546_v50 = vrot.slane %v1598_v37, 4 }
 0x154   : > { %v422_v47 = vrot.slane %v393_v35, 4 }
 0x155   : > { %v534_v49 = vrot.slane %v1595_v36, 4 }
 0x156   : > { %v344_v10 = vpop.permute.xlu1 %343  ;;  %v341_v14 = vpop.permute.xlu2 %340 }
 0x157   : > { %v368_v11 = vpop.permute.xlu0 %367  ;;  %v412_v18 = vrot.slane %v341_v14, 4  ;;  %v411_v28 = vsel %vm374_vm1, %v410_v21, %v341_v14  ;;  %v398_v43 = vrot.slane %v344_v10, 4 }
 0x158   : > { %v510_v30 = vrot.slane %v368_v11, 4  ;;  %v417_v39 = vperm.slane %v411_v28, %v1582_v20 }
 0x159   : > { %v413_v29 = vsel %vm374_vm1, %v347_v8, %v412_v18 }
 0x15a   : > { %v1603_v40 = vperm.slane %v413_v29, %v1582_v20  ;;  %v446_v52 = vrot.slane %v417_v39, 4 }
 0x15c   : > { %v458_v53 = vrot.slane %v1603_v40, 4 }
 0x15e   : > { %v1585_v23 = vpop.permute.xlu1 %370 }
 0x15f   : > { %v362_v27 = vpop.permute.xlu0 %361  ;;  %v522_v61 = vrot.slane %v1585_v23, 4 }
 0x160   : > { %v512_v32 = vrot.slane %v362_v27, 4  ;;  %v511_v38 = vsel %vm374_vm1, %v510_v30, %v362_v27 }
 0x161   : > { %v1609_v45 = vperm.slane %v511_v38, %v1582_v20 }
 0x162   : > { %v513_v44 = vsel %vm374_vm1, %v368_v11, %v512_v32 }
 0x163   : > { %v1618_v57 = vperm.slane %v513_v44, %v1582_v20  ;;  %v560_v62 = vrot.slane %v1609_v45, 4 }
 0x166   : > { %v338_v51 = vpop.permute.xlu1 %337 }
 0x167   : > { %v399_v54 = vsel %vm374_vm1, %v398_v43, %v338_v51  ;;  %v400_v55 = vrot.slane %v338_v51, 4  ;;  %v332_v56 = vpop.permute.xlu0 %331 }
 0x168   : > { %v405_v58 = vperm.slane %v399_v54, %v1582_v20  ;;  %v373_v59 = vrot.slane %v332_v56, 4  ;;  %v377_v60 = vsel %vm374_vm1, %v332_v56, %v376_v42 }
 0x169   : > { %v401_v63 = vsel %vm374_vm1, %v344_v10, %v400_v55  ;;  %v385_v0 = vperm.slane %v377_v60, %v1582_v20  ;;  %v572_v10 = vrot.slane %v1618_v57, 4 }
 0x16a   : > { %v1627_v1 = vperm.slane %v401_v63, %v1582_v20  ;;  %v448_v2 = vrot.slane %v405_v58, 4  ;;  %v375_v4 = vsel %vm374_vm1, %v373_v59, %v1563_v3  ;;  %v447_v6 = vsel %vm374_vm1, %v446_v52, %v405_v58 }
 0x16b   : > { %v381_v7 = vperm.slane %v375_v4, %v1582_v20  ;;  %v435_v8 = vsel %vm374_vm1, %v434_v48, %v385_v0  ;;  %v436_v9 = vrot.slane %v385_v0, 4  ;;  %v1635_v11 = vperm.slane %v447_v6, %v1611_v46 }
 0x16c   : > { %v449_v12 = vsel %vm374_vm1, %v417_v39, %v448_v2  ;;  %v1640_v13 = vperm.slane %v435_v8, %v1611_v46  ;;  %v459_v3 = vsel %vm374_vm1, %v458_v53, %v1627_v1  ;;  %v460_v14 = vrot.slane %v1627_v1, 4 }
 0x16d   : > { %v424_v15 = vrot.slane %v381_v7, 4  ;;  %v423_v16 = vsel %vm374_vm1, %v422_v47, %v381_v7  ;;  %v1647_v17 = vperm.slane %v449_v12, %v1611_v46  ;;  %v470_v21 = vrot.slane %v1635_v11, 4 }
 0x16e   : > { %v365_v18 = vpop.permute.xlu1 %364  ;;  %v429_v19 = vperm.slane %v423_v16, %v1611_v46  ;;  %v1652_v22 = vperm.slane %v459_v3, %v1611_v46  ;;  %v480_v24 = vrot.slane %v1640_v13, 4  ;;  %v437_v29 = vsel %vm374_vm1, %v397_v31, %v436_v9 }
 0x16f   : > { %v523_v25 = vsel %vm374_vm1, %v522_v61, %v365_v18  ;;  %v524_v26 = vrot.slane %v365_v18, 4  ;;  %v350_v27 = vpop.permute.xlu0 %349  ;;  %v425_v28 = vsel %vm374_vm1, %v393_v35, %v424_v15  ;;  %v474_v43 = vrot.slane %v1647_v17, 4 }
 0x170   : > { %v529_v30 = vperm.slane %v523_v25, %v1582_v20  ;;  %v487_v32 = vsel %vm374_vm1, %v486_v41, %v350_v27  ;;  %v488_v33 = vrot.slane %v350_v27, 4  ;;  %v472_v34 = vrot.slane %v429_v19, 4  ;;  %v598_v25 = vld [vmem:[%s1551_s29] sm:$0xf] }
 0x171   : > { %v525_v38 = vsel %vm374_vm1, %v1585_v23, %v524_v26  ;;  %v493_v39 = vperm.slane %v487_v32, %v1582_v20  ;;  %v433_v42 = vperm.slane %v425_v28, %v1611_v46  ;;  %v471_v18 = vsel %vm374_vm1, %v470_v21, %v429_v19 }
 0x172   : > { %v533_v44 = vperm.slane %v525_v38, %v1582_v20  ;;  %v558_v35 = vrot.slane %v529_v30, 4  ;;  %v489_v31 = vsel %vm374_vm1, %v1580_v5, %v488_v33  ;;  %v561_v47 = vsel %vm374_vm1, %v529_v30, %v560_v62 }
 0x173   : > { %v497_v41 = vperm.slane %v489_v31, %v1582_v20  ;;  %v536_v48 = vrot.slane %v493_v39, 4  ;;  %v535_v51 = vsel %vm374_vm1, %v534_v49, %v493_v39  ;;  %v569_v23 = vperm.slane %v561_v47, %v1611_v46 }
 0x174   : > { %v570_v52 = vrot.slane %v533_v44, 4  ;;  %v541_v53 = vperm.slane %v535_v51, %v1611_v46  ;;  %v559_v54 = vsel %vm374_vm1, %v558_v35, %v1609_v45  ;;  %v473_v55 = vsel %vm374_vm1, %v1635_v11, %v472_v34  ;;  %v599_v11 = vld [vmem:[%s1551_s29 + $0x4] sm:$0xf]  ;;  %s940_s29 = sshll.u32 %s1542_s1, 5 }
 0x175   : > { %v548_v56 = vrot.slane %v497_v41, 4  ;;  %v565_v5 = vperm.slane %v559_v54, %v1611_v46  ;;  %v537_v20 = vsel %vm374_vm1, %v1595_v36, %v536_v48  ;;  %v586_v58 = vrot.slane %v569_v23, 4  ;;  %s298_s18 = scalar_lea.vmem [#allocation10], %s940_s29 }
 0x176   : > { %v584_v59 = vrot.slane %v541_v53, 4  ;;  %v545_v49 = vperm.slane %v537_v20, %v1611_v46  ;;  %v475_v60 = vsel %vm374_vm1, %v474_v43, %v433_v42  ;;  %v547_v61 = vsel %vm374_vm1, %v546_v50, %v497_v41  ;;  %s792_s17 = sshll.u32 %s298_s18, 4  ;;  %s793_s17 = int_to_ptr.vmem [resolvable:$true] %s792_s17 }
 0x177   : > { %v582_v45 = vrot.slane %v565_v5, 4  ;;  %v553_v62 = vperm.slane %v547_v61, %v1611_v46  ;;  %v571_v63 = vsel %vm374_vm1, %v570_v52, %v1618_v57  ;;  %v549_v36 = vsel %vm374_vm1, %v1598_v37, %v548_v56 }
 0x178   : > { %v585_v0 = vsel %vm374_vm1, %v565_v5, %v584_v59  ;;  %v587_v2 = vsel %vm374_vm1, %v586_v58, %v545_v49  ;;  %v588_v4 = vrot.slane %v545_v49, 4  ;;  %v577_v6 = vperm.slane %v571_v63, %v1611_v46 }
 0x179   : > { %640 = vmatpush.msra.mxu2 %v585_v0  ;;  %663 = vmatpush.msra.mxu3 %v587_v2  ;;  %v583_v50 = vsel %vm374_vm1, %v582_v45, %v541_v53  ;;  %v592_v7 = vrot.slane %v553_v62, 4  ;;  %v557_v8 = vperm.slane %v549_v36, %v1611_v46  ;;  %v573_v57 = vsel %vm374_vm1, %v533_v44, %v572_v10 }
 0x17a   : > { %617 = vmatpush.msra.mxu1 %v583_v50  ;;  %v589_v37 = vsel %vm374_vm1, %v569_v23, %v588_v4  ;;  %v581_v9 = vperm.slane %v573_v57, %v1611_v46  ;;  %v476_v12 = vrot.slane %v433_v42, 4  ;;  %v590_v3 = vrot.slane %v577_v6, 4 }
 0x17b   : > { %641 = vmatpush.msra.mxu2 %v473_v55  ;;  %664 = vmatpush.msra.mxu3 %v475_v60  ;;  %v593_v15 = vsel %vm374_vm1, %v577_v6, %v592_v7  ;;  %v596_v16 = vrot.slane %v557_v8, 4  ;;  %v445_v26 = vperm.slane %v437_v29, %v1611_v46  ;;  %v461_v30 = vsel %vm374_vm1, %v1603_v40, %v460_v14 }
 0x17c   : > { %683 = vmatpush.msrb.mxu0 %v589_v37  ;;  %v594_v10 = vrot.slane %v581_v9, 4  ;;  %v477_v27 = vsel %vm374_vm1, %v1647_v17, %v476_v12  ;;  %v591_v28 = vsel %vm374_vm1, %v590_v3, %v553_v62  ;;  %618 = vmatpush.msra.mxu1 %v471_v18  ;;  %v469_v19 = vperm.slane %v461_v30, %v1611_v46 }
 0x17d   : > { %726 = vmatpush.msrb.mxu2 %v593_v15  ;;  %v597_v21 = vsel %vm374_vm1, %v581_v9, %v596_v16  ;;  %v478_v29 = vrot.slane %v1652_v22, 4  ;;  %v484_v32 = vrot.slane %v445_v26, 4  ;;  %944 = vmatmul.msk.f32.vlgmr.msra.gmra.mxu3 %vm303_vm0, %v598_v25  ;;  %v481_v40 = vsel %vm374_vm1, %v1652_v22, %v480_v24 }
 0x17e   : > { %943 = vmatmul.msk.f32.vlgmr.msra.gmra.mxu2 %vm303_vm0, %v599_v11  ;;  %v595_v33 = vsel %vm374_vm1, %v594_v10, %v557_v8  ;;  %684 = vmatpush.msrb.mxu0 %v477_v27  ;;  %v482_v1 = vrot.slane %v469_v19, 4 }
 0x17f   : > { %749 = vmatpush.msrb.mxu3 %v595_v33  ;;  %706 = vmatpush.msrb.mxu1 %v591_v28  ;;  %v479_v46 = vsel %vm374_vm1, %v478_v29, %v1640_v13  ;;  %v485_v17 = vsel %vm374_vm1, %v469_v19, %v484_v32 }
 0x180   : > { %727 = vmatpush.msrb.mxu2 %v481_v40  ;;  %769 = vmatpush.msra.mxu0 %v597_v21  ;;  %v483_v14 = vsel %vm374_vm1, %v482_v1, %v445_v26 }
 0x181   : > { %707 = vmatpush.msrb.mxu1 %v479_v46  ;;  %945 = vmatmul.msk.f32.vlgmr.msrb.gmra.mxu0 %vm303_vm0, %v599_v11 }
 0x182   : > { %750 = vmatpush.msrb.mxu3 %v483_v14  ;;  %770 = vmatpush.msra.mxu0 %v485_v17 }
 0x183   : > { %942 = vmatmul.msk.f32.vlgmr.msra.gmra.mxu1 %vm303_vm0, %v598_v25 }
 0x185   : > { %952 = vmatmul.msk.f32.vlgmr.msrb.gmra.mxu3 %vm303_vm0, %v598_v25 }
 0x186   : > { %949 = vmatmul.msk.f32.vlgmr.msrb.gmra.mxu2 %vm303_vm0, %v599_v11 }
 0x189   : > { %953 = vmatmul.msk.f32.vlgmr.msra.gmra.mxu0 %vm303_vm0, %v599_v11 }
 0x18b   : > { %948 = vmatmul.msk.f32.vlgmr.msrb.gmra.mxu1 %vm303_vm0, %v598_v25 }
 0x1fe   : > { %v686_v13 = vpop.f32.mrf.mxu0 }
 0x1ff   : > { %947 = vst.msk [vmem:[%s298_s18 + $0x14] sm:$0xf] %vm646_vm2, %v686_v13 }
 0x200   : > { %v620_v22 = vpop.f32.mrf.mxu1  ;;  %v666_v34 = vpop.f32.mrf.mxu3 }
 0x201   : > { %v643_v24 = vpop.f32.mrf.mxu2  ;;  %647 = vst.msk [vmem:[%s298_s18] sm:$0xf] %vm646_vm2, %v620_v22 }
 0x202   : > { %648 = vst.msk [vmem:[%s298_s18 + $0x10] sm:$0xf] %vm646_vm2, %v643_v24 }
 0x203   : > { %946 = vst.msk [vmem:[%s298_s18 + $0x4] sm:$0xf] %vm646_vm2, %v666_v34 }
 0x206   : > { %v772_v38 = vpop.f32.mrf.mxu0 }
 0x207   : > { %955 = vst.msk [vmem:[%s298_s18 + $0x1c] sm:$0xf] %vm646_vm2, %v772_v38 }
 0x208   : > { %v709_v39 = vpop.f32.mrf.mxu1  ;;  %v752_v43 = vpop.f32.mrf.mxu3 }
 0x209   : > { %v729_v42 = vpop.f32.mrf.mxu2  ;;  %950 = vst.msk [vmem:[%s298_s18 + $0x8] sm:$0xf] %vm646_vm2, %v709_v39 }
 0x20a   : > { %951 = vst.msk [vmem:[%s298_s18 + $0x18] sm:$0xf] %vm646_vm2, %v729_v42 }
 0x20b   : > { %954 = vst.msk [vmem:[%s298_s18 + $0xc] sm:$0xf] %vm646_vm2, %v752_v43 }
 0x20c   : > { %1217 = shalt.err (!%p1214_p0)
}
 0x20d   : > { %s1330_s1 = smov 64   ;;  %s1331_s23 = smov 4  }
 0x20e   : > { %972 = dma.vmem_to_hbm [thread:$0]  (%p1452_p9), %s793_s17, 512, %s795_s2, %s779_s24, %s1330_s1, %s1330_s1, %s1331_s23  }
 0x20f PF: > { %s809_s5 = sand.u32 1, %s1286_s22   ;;  %p1811_p6 = scmp.ge.s32.totalorder %s1306_s26, 2 }
 0x210   : > { %s810_s13 = scalar_lea.sflag [#allocation6], %s809_s5 }
 0x211   : > { %p987_p12 = pnand %p1811_p6, %p1461_p13 }
 0x213   : > { %p988_p8 = pneg %p987_p12 }
 0x215   : > { %1269 = dma.done.wait (%p988_p8), %s810_s13, 512  }
 0x216   : > { %1271 = vsyncadd (%p988_p8), %s810_s13, 4294966784  ;;  %s31_s26 = sadd.s32 1, %s1306_s26   ;;  %s1812_s11 = sld [smem:[#allocation18_spill]] }
 0x217   : > { %p28_p10 = scmp.ge.s32.totalorder %s31_s26, 4   ;;  %s1813_s23 = sld [smem:[#allocation20_spill]] }
 0x218   : > { %s1814_s29 = sld [smem:[#allocation19_spill]]  ;;  %s1815_s19 = smov %s1278_s20 }
 0x219   : > { %s1816_s20 = smov %s1282_s21  ;;  %s1817_s21 = smov %s1504_s15 }
 0x21a   : > { %s1818_s22 = smov %s1290_s0  ;;  %s1820_s24 = smov %s1302_s25 }
 0x21b   :  { %30 = sbr.rel (!%p28_p10) target bundleno = 17 (0x11), region = 104 }
 0x21c   : > { %s1819_s0 = smov %s1812_s11 }
 0x21e   : > { %s1821_s25 = smov %s1814_s29 }
 0x220   :  { %816 = vsyncpa [#allocation5], 1 }
 0x221   :  { %818 = vsyncpa [#allocation5 + $0x1], 1 }
 0x222   :  { %819 = vsyncpa [#allocation8], 1 }
 0x223   :  { %821 = vsyncpa [#allocation8 + $0x1], 1 }
 0x224   :  { %822 = vsyncpa [#allocation6], 1 }
 0x225   :  { %824 = vsyncpa [#allocation6 + $0x1], 1 }

</bundles_post_ra>
